<compile_context>
chip_gen: v7x
topology: tpu7x:2x2x1
jax: 0.10.0
libtpu: 0.0.40
codegen_flags: <defaults>
</compile_context>

<pallas_src>
import jax
import jax.numpy as jnp
from jax.experimental import pallas as pl
from jax.experimental.pallas import tpu as pltpu


# ----------------------------------------------------------------------------
# Helpers
# ----------------------------------------------------------------------------
def _round_up(v, m):
    return ((v + m - 1) // m) * m


def _sublane_multiple(dtype):
    # Second-to-last-dim layout multiple: 8 for 32-bit, 16 for 16-bit,
    # 32 for 8-bit (sub-32-bit dtypes pack along sublanes).
    bits = jnp.dtype(dtype).itemsize * 8
    if bits >= 32:
        return 8
    if bits == 16:
        return 16
    return 32


def _vmem_capacity_bytes():
    try:
        return int(pltpu.get_tpu_info().vmem_capacity_bytes)
    except Exception:
        return 64 * 1024 * 1024  # conservative default (v7x per-core VMEM)


def _pick_tile(dim, cap, multiple):
    """Largest tile <= cap (cap is a multiple of `multiple`) minimizing padding."""
    dim = max(int(dim), 1)
    if dim <= cap:
        return _round_up(dim, multiple)
    nblocks = -(-dim // cap)
    return _round_up(-(-dim // nblocks), multiple)


# ----------------------------------------------------------------------------
# Kernel: one (tm, tn) output tile, K streamed along grid axis 2.
# ----------------------------------------------------------------------------
def fc_relu_kernel(x_ref, w_ref, b_ref, o_ref, acc_ref):
    # x_ref: (tm, tk)  w_ref: (tk, tn)  b_ref: (1, tn) f32
    # o_ref: (tm, tn)  acc_ref: (tm, tn) f32 scratch, resident across K.
    k = pl.program_id(2)
    contrib = jnp.dot(x_ref[...], w_ref[...], preferred_element_type=jnp.float32)

    @pl.when(k == 0)
    def _first():
        # Direct store instead of zero-init + accumulate: saves one full
        # tm x tn f32 VMEM write+read per output tile.
        acc_ref[...] = contrib

    @pl.when(k > 0)
    def _accum():
        acc_ref[...] += contrib

    @pl.when(k == pl.num_programs(2) - 1)
    def _epilogue():
        y = acc_ref[...] + b_ref[...]   # bias once per output tile
        y = jnp.maximum(y, 0.0)         # ReLU (module default act_fn)
        # Dropout(p=0) / eval mode is the identity -> nothing to do.
        o_ref[...] = y.astype(o_ref.dtype)


# ----------------------------------------------------------------------------
# Wrapper: weights prepared once, per-call only x handling.
# ----------------------------------------------------------------------------
class FcLayer:
    """Pallas TPU equivalent of fc_layer(in_size, out_size).forward:
       y = relu(x @ W + b)   (Dropout p=0 and batch_norm=False are identity).

    w: (in_size, out_size) -- transposed relative to torch's (out, in) weight.
    b: (out_size,)
    """

    def __init__(self, w, b, *, compute_dtype=jnp.bfloat16, out_dtype=None,
                 w_buffer_count=2):
        K, N = w.shape
        assert b.shape == (N,)
        self.K, self.N = K, N
        self.compute_dtype = jnp.dtype(compute_dtype)
        self.out_dtype = jnp.dtype(out_dtype) if out_dtype is not None else None
        self.w_buffer_count = int(w_buffer_count)

        vmem = _vmem_capacity_bytes()
        big_vmem = vmem >= 96 * 1024 * 1024           # v5e / v6e: 128 MiB VMEM
        # Large tiles cut operand re-streaming (x read ceil(N/tn) times,
        # W read ceil(M/tm) times) and amortize per-grid-step overhead.
        self.cap_mn = 1024 if big_vmem else 512        # v7x: only 64 MiB VMEM
        self.cap_k = 2048 if big_vmem else 1024
        self.vmem_limit = (100 if big_vmem else 48) * 1024 * 1024

        self.tn = _pick_tile(N, self.cap_mn, 128)
        self.tk = _pick_tile(K, self.cap_k, 128)

        # v7x has 2 TensorCores: ensure at least one "parallel" grid axis has
        # >= 2 blocks when N is large enough (M may still be a single tile).
        if (not big_vmem) and (-(-N // self.tn) == 1) and self.tn >= 256:
            self.tn = _round_up(-(-N // 2), 128)

        self.Kp = _round_up(K, self.tk)
        self.Np = _round_up(N, self.tn)

        # Hoisted out of the per-call path: pad + cast static params once.
        # Zero K-padding contributes nothing to the dot; zero N-padding gives
        # relu(0 + 0) = 0 columns that are sliced off.
        self.w_p = jnp.pad(jnp.asarray(w),
                           ((0, self.Kp - K), (0, self.Np - N))
                           ).astype(self.compute_dtype)
        self.b_p = jnp.pad(jnp.asarray(b), (0, self.Np - N)
                           ).reshape(1, self.Np).astype(jnp.float32)

    def __call__(self, x):
        M, K = x.shape
        assert K == self.K
        out_dtype = self.out_dtype if self.out_dtype is not None else x.dtype

        # Sublane multiple: 16 for bf16 operands / outputs, 8 for f32.
        sub_m = max(_sublane_multiple(self.compute_dtype),
                    _sublane_multiple(out_dtype))
        tm = _pick_tile(M, self.cap_mn, sub_m)
        Mp = _round_up(M, tm)

        x_p = jnp.asarray(x)
        if (Mp, self.Kp) != (M, K):
            x_p = jnp.pad(x_p, ((0, Mp - M), (0, self.Kp - K)))
        x_p = x_p.astype(self.compute_dtype)

        grid = (Mp // tm, self.Np // self.tn, self.Kp // self.tk)  # K last

        w_spec_kwargs = {}
        if self.w_buffer_count != 2:   # optional deeper buffering of W stream
            w_spec_kwargs["pipeline_mode"] = pl.Buffered(self.w_buffer_count)

        tn, tk = self.tn, self.tk
        out_p = pl.pallas_call(
            fc_relu_kernel,
            out_shape=jax.ShapeDtypeStruct((Mp, self.Np), out_dtype),
            grid_spec=pltpu.PrefetchScalarGridSpec(
                num_scalar_prefetch=0,
                grid=grid,
                in_specs=[
                    pl.BlockSpec((tm, tk), lambda i, j, k: (i, k)),   # x tile
                    pl.BlockSpec((tk, tn), lambda i, j, k: (k, j),    # W tile
                                 **w_spec_kwargs),
                    pl.BlockSpec((1, tn), lambda i, j, k: (0, j)),    # bias
                ],
                out_specs=pl.BlockSpec((tm, tn), lambda i, j, k: (i, j)),
                scratch_shapes=[pltpu.VMEM((tm, tn), jnp.float32)],
            ),
            compiler_params=pltpu.CompilerParams(
                dimension_semantics=("parallel", "parallel", "arbitrary"),
                vmem_limit_bytes=self.vmem_limit,
            ),
        )(x_p, self.w_p, self.b_p)

        if (Mp, self.Np) != (M, self.N):
            out_p = out_p[:M, :self.N]
        return out_p


def fc_layer_forward(x, w, b, *, compute_dtype=jnp.bfloat16, out_dtype=None):
    """Convenience one-shot wrapper (for repeated calls build FcLayer once)."""
    return FcLayer(w, b, compute_dtype=compute_dtype, out_dtype=out_dtype)(x)


def reference_forward(x, w, b):
    return jnp.maximum(x @ w + b[None, :], 0.0)


if __name__ == "__main__":
    key = jax.random.PRNGKey(0)
    kx, kw, kb = jax.random.split(key, 3)

    # --- Small shapes consistent with the module: fc_layer(32, 16) ----------
    B, IN, OUT = 8, 32, 16
    x = jax.random.normal(kx, (B, IN), dtype=jnp.float32)
    bound = 1.0 / jnp.sqrt(IN)
    w = jax.random.uniform(kw, (IN, OUT), dtype=jnp.float32,
                           minval=-bound, maxval=bound)
    b = jax.random.uniform(kb, (OUT,), dtype=jnp.float32,
                           minval=-bound, maxval=bound)
    ref = reference_forward(x, w, b)

    # Default path: bf16 operands, f32 accumulation.
    layer_bf16 = FcLayer(w, b)  # compute_dtype=jnp.bfloat16 default
    out_bf16 = jax.block_until_ready(layer_bf16(x))
    assert out_bf16.shape == (B, OUT)
    assert jnp.allclose(out_bf16, ref, atol=5e-2, rtol=5e-2)

    # Full-precision opt-out path.
    layer_f32 = FcLayer(w, b, compute_dtype=jnp.float32)
    out_f32 = jax.block_until_ready(layer_f32(x))
    assert out_f32.shape == (B, OUT)
    assert jnp.allclose(out_f32, ref, atol=1e-5, rtol=1e-5)

    # --- Multi-tile shapes: exercise 3-D grid, K accumulation, N tiling -----
    B2, IN2, OUT2 = 512, 2560, 640
    kx2, kw2, kb2 = jax.random.split(jax.random.PRNGKey(1), 3)
    x2 = jax.random.normal(kx2, (B2, IN2), dtype=jnp.float32)
    bound2 = 1.0 / jnp.sqrt(IN2)
    w2 = jax.random.uniform(kw2, (IN2, OUT2), dtype=jnp.float32,
                            minval=-bound2, maxval=bound2)
    b2 = jax.random.uniform(kb2, (OUT2,), dtype=jnp.float32,
                            minval=-bound2, maxval=bound2)
    ref2 = reference_forward(x2, w2, b2)

    out2_bf16 = jax.block_until_ready(FcLayer(w2, b2)(x2))
    assert out2_bf16.shape == (B2, OUT2)
    assert jnp.allclose(out2_bf16, ref2, atol=5e-2, rtol=5e-2)

    out2_f32 = jax.block_until_ready(
        FcLayer(w2, b2, compute_dtype=jnp.float32)(x2))
    assert out2_f32.shape == (B2, OUT2)
    assert jnp.allclose(out2_f32, ref2, atol=2e-3, rtol=2e-3)

    print("KERNEL_OK")
</pallas_src>

<mosaic_0001>
module attributes {stable_mosaic.version = 11 : i64} {
  func.func @fc_relu_kernel(%arg0: i32, %arg1: i32, %arg2: i32, %arg3: memref<16x128xbf16, #tpu.memory_space<vmem>>, %arg4: memref<128x128xbf16, #tpu.memory_space<vmem>>, %arg5: memref<1x128xf32, #tpu.memory_space<vmem>>, %arg6: memref<16x128xf32, #tpu.memory_space<vmem>>, %arg7: memref<16x128xf32, #tpu.memory_space<vmem>>) attributes {dimension_semantics = [#tpu.dimension_semantics<parallel>, #tpu.dimension_semantics<parallel>, #tpu.dimension_semantics<arbitrary>], iteration_bounds = array<i64: 1, 1, 1>, scalar_prefetch = 0 : i64, scratch_operands = 1 : i64, tpu.core_type = #tpu.core_type<tc>, window_params = [{transform_indices = @transform_0, window_bounds = array<i64: 16, 128>}, {transform_indices = @transform_1, window_bounds = array<i64: 128, 128>}, {transform_indices = @transform_2, window_bounds = array<i64: 1, 128>}, {transform_indices = @transform_3, window_bounds = array<i64: 16, 128>}]} {
    %c0 = arith.constant 0 : index
    %c0_0 = arith.constant 0 : index
    %0 = vector.load %arg3[%c0, %c0_0] : memref<16x128xbf16, #tpu.memory_space<vmem>>, vector<16x128xbf16>
    %c0_1 = arith.constant 0 : index
    %c0_2 = arith.constant 0 : index
    %1 = vector.load %arg4[%c0_1, %c0_2] : memref<128x128xbf16, #tpu.memory_space<vmem>>, vector<128x128xbf16>
    %cst = arith.constant dense<0.000000e+00> : vector<16x128xf32>
    %2 = tpu.matmul %0, %1, %cst {dimension_numbers = #tpu.dot_dimension_numbers<[1], [0], [0], [1], [0, 0, 1, 1], [], []>} : vector<16x128xbf16>, vector<128x128xbf16>, vector<16x128xf32> -> vector<16x128xf32>
    %c0_i32 = arith.constant 0 : i32
    %3 = arith.cmpi eq, %arg2, %c0_i32 : i32
    %4 = arith.extui %3 : i1 to i32
    %c0_i32_3 = arith.constant 0 : i32
    %5 = arith.cmpi ne, %4, %c0_i32_3 : i32
    scf.if %5 {
      %c0_8 = arith.constant 0 : index
      %c0_9 = arith.constant 0 : index
      %12 = vector.load %arg7[%c0_8, %c0_9] : memref<16x128xf32, #tpu.memory_space<vmem>>, vector<16x128xf32>
      tpu.vector_store %arg7[%c0_8, %c0_9], %2 {strides = array<i32>} : memref<16x128xf32, #tpu.memory_space<vmem>>, vector<16x128xf32>,
    } else {
    }
    %c0_i32_4 = arith.constant 0 : i32
    %6 = arith.cmpi sgt, %arg2, %c0_i32_4 : i32
    %7 = arith.extui %6 : i1 to i32
    %c0_i32_5 = arith.constant 0 : i32
    %8 = arith.cmpi ne, %7, %c0_i32_5 : i32
    scf.if %8 {
      %c0_8 = arith.constant 0 : index
      %c0_9 = arith.constant 0 : index
      %12 = vector.load %arg7[%c0_8, %c0_9] : memref<16x128xf32, #tpu.memory_space<vmem>>, vector<16x128xf32>
      %13 = arith.addf %12, %2 : vector<16x128xf32>
      %c0_10 = arith.constant 0 : index
      %c0_11 = arith.constant 0 : index
      %14 = vector.load %arg7[%c0_10, %c0_11] : memref<16x128xf32, #tpu.memory_space<vmem>>, vector<16x128xf32>
      tpu.vector_store %arg7[%c0_10, %c0_11], %13 {strides = array<i32>} : memref<16x128xf32, #tpu.memory_space<vmem>>, vector<16x128xf32>,
    } else {
    }
    %c0_i32_6 = arith.constant 0 : i32
    %9 = arith.cmpi eq, %arg2, %c0_i32_6 : i32
    %10 = arith.extui %9 : i1 to i32
    %c0_i32_7 = arith.constant 0 : i32
    %11 = arith.cmpi ne, %10, %c0_i32_7 : i32
    scf.if %11 {
      %c0_8 = arith.constant 0 : index
      %c0_9 = arith.constant 0 : index
      %12 = vector.load %arg7[%c0_8, %c0_9] : memref<16x128xf32, #tpu.memory_space<vmem>>, vector<16x128xf32>
      %c0_10 = arith.constant 0 : index
      %c0_11 = arith.constant 0 : index
      %13 = vector.load %arg5[%c0_10, %c0_11] : memref<1x128xf32, #tpu.memory_space<vmem>>, vector<1x128xf32>
      %14 = vector.broadcast %13 : vector<1x128xf32> to vector<16x128xf32>
      %15 = arith.addf %12, %14 : vector<16x128xf32>
      %cst_12 = arith.constant 0.000000e+00 : f32
      %16 = vector.broadcast %cst_12 : f32 to vector<16x128xf32>
      %17 = arith.maximumf %15, %16 : vector<16x128xf32>
      %c0_13 = arith.constant 0 : index
      %c0_14 = arith.constant 0 : index
      %18 = vector.load %arg6[%c0_13, %c0_14] : memref<16x128xf32, #tpu.memory_space<vmem>>, vector<16x128xf32>
      tpu.vector_store %arg6[%c0_13, %c0_14], %17 {strides = array<i32>} : memref<16x128xf32, #tpu.memory_space<vmem>>, vector<16x128xf32>,
    } else {
    }
    return
  }
  func.func @transform_0(%arg0: i32, %arg1: i32, %arg2: i32) -> (i32, i32) {
    %c0_i32 = arith.constant 0 : i32
    return %arg0, %arg2 : i32, i32
  }
  func.func @transform_1(%arg0: i32, %arg1: i32, %arg2: i32) -> (i32, i32) {
    %c0_i32 = arith.constant 0 : i32
    return %arg2, %arg1 : i32, i32
  }
  func.func @transform_2(%arg0: i32, %arg1: i32, %arg2: i32) -> (i32, i32) {
    %c0_i32 = arith.constant 0 : i32
    %c0_i32_0 = arith.constant 0 : i32
    return %c0_i32, %arg1 : i32, i32
  }
  func.func @transform_3(%arg0: i32, %arg1: i32, %arg2: i32) -> (i32, i32) {
    %c0_i32 = arith.constant 0 : i32
    return %arg0, %arg1 : i32, i32
  }
}

</mosaic_0001>

<bundles_post_ra>
// kernel: tpu_custom_call.1
= control target key start
LH: loop header
LB: loop body
LE: loop exit
PB: predicated region body
PF: predicated region fallthrough
CT: control target
= control target key end

     0   :  { %8 = vsyncpa [#allocation4], 0  ;;  %s406_s0 = inlined_call_operand.hbm [shape: bf16[16,128], index: 0, kind: input, shape index: {}]   ;;  %s407_s1 = inlined_call_operand.hbm [shape: bf16[128,128], index: 1, kind: input, shape index: {}]   ;;  %s408_s2 = inlined_call_operand.vmem [shape: f32[1,128], index: 2, kind: input, shape index: {}]   ;;  %s409_s3 = inlined_call_operand.hbm [shape: f32[16,128], index: 3, kind: output, shape index: {}]  }
   0x1   :  { %9 = vsyncpa [#allocation7], 0 }
   0x2   :  { %10 = vsyncpa [#allocation5], 0  ;;  %s338_s12 = smov [#allocation3]   ;;  %s266_s16 = scalar_lea.hbm %s406_s0, 128 }
   0x3   :  { %s16_s13 = sshll.u32 %s338_s12, 4  ;;  %p267_p0 = scmp.ne.s32.totalorder %s406_s0, %s266_s16  ;;  %s17_s13 = int_to_ptr.vmem [resolvable:$true] %s16_s13 }
   0x4   :  { %p270_p1 = scmp.lt.u32.totalorder %s266_s16, %s406_s0 }
   0x6   :  { %p272_p2 = pnand %p270_p1, %p267_p0 }
   0x8   :  { %275 = shalt.err (!%p272_p2)
}
   0x9   :  { %s276_s21 = scalar_lea.vmem %s17_s13, 128  ;;  %p281_p4 = scmp.lt.s32.totalorder %s17_s13, %s17_s13 }
   0xa   :  { %p277_p3 = scmp.ne.s32.totalorder %s17_s13, %s276_s21  ;;  %p282_p5 = scmp.lt.s32.totalorder %s276_s21, %s276_s21 }
   0xc   :  { %p283_p6 = por %p282_p5, %p281_p4 }
   0xe   :  { %p284_p7 = pnand %p283_p6, %p277_p3 }
  0x10   :  { %287 = shalt.err (!%p284_p7)
}
  0x11   :  { %s339_s22 = smov 64   ;;  %s340_s23 = smov 4  }
  0x12   :  { %22 = dma.hbm_to_vmem [thread:$0]  %s406_s0, 128, %s17_s13, [#allocation4], %s339_s22, %s339_s22, %s340_s23  }
  0x13   :  { %s341_s26 = smov [#allocation6]   ;;  %s288_s30 = scalar_lea.hbm %s407_s1, 1024 }
  0x14   :  { %s28_s27 = sshll.u32 %s341_s26, 4  ;;  %p289_p8 = scmp.ne.s32.totalorder %s407_s1, %s288_s30  ;;  %s29_s27 = int_to_ptr.vmem [resolvable:$true] %s28_s27 }
  0x15   :  { %p292_p9 = scmp.lt.u32.totalorder %s288_s30, %s407_s1 }
  0x17   :  { %p294_p10 = pnand %p292_p9, %p289_p8 }
  0x19   :  { %297 = shalt.err (!%p294_p10)
}
  0x1a   :  { %s298_s8 = scalar_lea.vmem %s29_s27, 1024  ;;  %p303_p12 = scmp.lt.s32.totalorder %s29_s27, %s29_s27 }
  0x1b   :  { %p299_p11 = scmp.ne.s32.totalorder %s29_s27, %s298_s8  ;;  %p304_p13 = scmp.lt.s32.totalorder %s298_s8, %s298_s8 }
  0x1d   :  { %p305_p0 = por %p304_p13, %p303_p12 }
  0x1f   :  { %p306_p1 = pnand %p305_p0, %p299_p11 }
  0x21   :  { %309 = shalt.err (!%p306_p1)
}
  0x22   :  { %34 = dma.hbm_to_vmem [thread:$0]  %s407_s1, 1024, %s29_s27, [#allocation7], %s339_s22, %s339_s22, %s340_s23  }
  0x23   :  { %332 = dma.done.wait [#allocation4], 128  }
  0x24   :  { %333 = vsyncadd [#allocation4], 4294967168 }
  0x25   :  { %334 = dma.done.wait [#allocation7], 1024  }
  0x26   :  { %335 = vsyncadd [#allocation7], 4294966272  ;;  %v342_v0 = vmov 0.0   ;;  %vm343_vm0 = vmmov 0   ;;  %v257_v1 = vld [vmem:[#allocation6] sm:$0xff]   ;;  %v258_v2 = vld [vmem:[#allocation6 + $0x8] sm:$0xff]  }
  0x27   :  { %228 = vmatprep.subr.bf16.mxu0 %v342_v0  ;;  %244 = vmatprep.mubr.msk.bf16.mxu0 %vm343_vm0, %v342_v0  ;;  %v259_v3 = vld [vmem:[#allocation6 + $0x10] sm:$0xff]   ;;  %v260_v4 = vld [vmem:[#allocation6 + $0x18] sm:$0xff]   ;;  %v261_v5 = vld [vmem:[#allocation6 + $0x20] sm:$0xff]   ;;  %s344_s11 = smov [#allocation8]  }
  0x28   :  { %229 = vmatpush3.bf16.msra.mxu0 %v257_v1  ;;  %v262_v6 = vld [vmem:[#allocation6 + $0x28] sm:$0xff]   ;;  %v263_v7 = vld [vmem:[#allocation6 + $0x30] sm:$0xff]   ;;  %v264_v8 = vld [vmem:[#allocation6 + $0x38] sm:$0xff]   ;;  %s196_s12 = sshll.u32 %s344_s11, 4  ;;  %s197_s12 = int_to_ptr.vmem [resolvable:$true] %s196_s12 }
  0x29   :  { %230 = vmatprep.subr.bf16.mxu0 %v342_v0  ;;  %v265_v9 = vld [vmem:[#allocation3] sm:$0xff]   ;;  %s310_s13 = scalar_lea.vmem %s197_s12, 256  ;;  %p315_p3 = scmp.lt.s32.totalorder %s197_s12, %s197_s12 }
  0x2a   :  { %v218_v10 = vld [vmem:[%s408_s2] ss:$0 sm:$0xff]  ;;  %p311_p2 = scmp.ne.s32.totalorder %s197_s12, %s310_s13  ;;  %p316_p4 = scmp.lt.s32.totalorder %s310_s13, %s310_s13 }
  0x2c   :  { %231 = vmatpush3.bf16.msra.mxu0 %v258_v2  ;;  %p317_p5 = por %p316_p4, %p315_p3 }
  0x2d   :  { %232 = vmatprep.subr.bf16.mxu0 %v342_v0 }
  0x2e   :  { %p318_p6 = pnand %p317_p5, %p311_p2 }
  0x30   :  { %233 = vmatpush3.bf16.msra.mxu0 %v259_v3 }
  0x31   :  { %234 = vmatprep.subr.bf16.mxu0 %v342_v0 }
  0x34   :  { %235 = vmatpush3.bf16.msra.mxu0 %v260_v4 }
  0x35   :  { %236 = vmatprep.subr.bf16.mxu0 %v342_v0 }
  0x38   :  { %237 = vmatpush3.bf16.msra.mxu0 %v261_v5 }
  0x39   :  { %238 = vmatprep.subr.bf16.mxu0 %v342_v0 }
  0x3c   :  { %239 = vmatpush3.bf16.msra.mxu0 %v262_v6 }
  0x3d   :  { %240 = vmatprep.subr.bf16.mxu0 %v342_v0 }
  0x40   :  { %241 = vmatpush3.bf16.msra.mxu0 %v263_v7 }
  0x41   :  { %242 = vmatprep.subr.bf16.mxu0 %v342_v0 }
  0x44   :  { %243 = vmatpush3.bf16.msra.mxu0 %v264_v8 }
  0x47   :  { %245 = vmatmul.mubr.bf16.vlgmr.msra.gmra.mrb[0].mxu0 %v265_v9 }
 0x11a   :  { %v150_v11 = vpop.f32.mrb[0].mxu0 }
 0x11b   :  { %v185_v12 = vadd.f32 %v218_v10, %v150_v11  ;;  %v246_v13 = vpop.f32.mrb[1].mxu0 }
 0x11c   :  { %v153_v14 = vpop.f32.mrb[2].mxu0 }
 0x11d   :  { %v187_v15 = vmax.f32 %v185_v12, 0.0  ;;  %v186_v16 = vadd.f32 %v218_v10, %v153_v14  ;;  %v247_v17 = vpop.f32.mrb[3].mxu0 }
 0x11f   :  { %189 = vst [vmem:[#allocation8] sm:$0xff] %v187_v15  ;;  %v188_v18 = vmax.f32 %v186_v16, 0.0 }
 0x121   :  { %190 = vst [vmem:[#allocation8 + $0x8] sm:$0xff] %v188_v18 }
 0x122   :  { %321 = shalt.err (!%p318_p6)
}
 0x123   :  { %s322_s15 = scalar_lea.hbm %s409_s3, 256 }
 0x124   :  { %p323_p7 = scmp.ne.s32.totalorder %s409_s3, %s322_s15  ;;  %p326_p8 = scmp.lt.u32.totalorder %s322_s15, %s409_s3 }
 0x126   :  { %p328_p9 = pnand %p326_p8, %p323_p7 }
 0x128   :  { %331 = shalt.err (!%p328_p9)
}
 0x129   :  { %s345_s20 = smov 128   ;;  %s346_s21 = smov 8  }
 0x12a   :  { %202 = dma.vmem_to_hbm [thread:$0]  %s197_s12, 256, %s409_s3, [#allocation5], %s345_s20, %s345_s20, %s346_s21  }
 0x12b   :  { %336 = dma.done.wait [#allocation5], 256  }
 0x12c   :  { %337 = vsyncadd [#allocation5], 4294967040 }
 0x12d   :  { %206 = vsyncpa [#allocation4], 1 }
 0x12e   :  { %207 = vsyncpa [#allocation7], 1 }
 0x12f   :  { %208 = vsyncpa [#allocation5], 1 }

</bundles_post_ra>
